<compile_context>
chip_gen: v5e
topology: v5e:2x2
jax: 0.10.0
libtpu: 0.0.40
codegen_flags: <defaults>
</compile_context>

<pallas_src>
import math

import jax
import jax.numpy as jnp
from jax import lax
from jax.experimental import pallas as pl
from jax.experimental.pallas import tpu as pltpu


def _score_kernel(w_ref, s_ref, f_ref, o_ref):
    # ws = weight @ summary : (H, H) @ (H, 1) -> (H, 1).
    # Recomputed every grid step (H^2 MACs, hidden under the feature-tile DMA)
    # so no cross-step scratch is needed and the grid axis stays "parallel".
    ws = lax.dot_general(
        w_ref[...], s_ref[...],
        dimension_numbers=(((1,), (0,)), ((), ())),
        preferred_element_type=jnp.float32,
    )
    # o_tile = features_tile @ ws : contraction on the streamed tile's lane dim
    # (native MXU orientation — no XLU transpose of the multi-MiB tile).
    o_ref[...] = lax.dot_general(
        f_ref[...], ws.astype(f_ref.dtype),
        dimension_numbers=(((1,), (0,)), ((), ())),
        preferred_element_type=jnp.float32,
    ).astype(o_ref.dtype)


def _device_vmem_plan():
    """(feature-tile byte budget, scoped VMEM limit) gated by TPU generation."""
    kind = ""
    try:
        kind = jax.devices()[0].device_kind.lower()
    except Exception:  # pragma: no cover - defensive
        pass
    if "v7" in kind or "7x" in kind:
        # 3.2 TB/s HBM -> big tiles amortize per-step overhead, but only 64 MiB
        # physical VMEM: 2 x 12 MiB double-buffered tiles + W/s/out <= ~48 MiB.
        return 12 * 1024 * 1024, 48 * 1024 * 1024
    if "v6" in kind:
        return 8 * 1024 * 1024, 64 * 1024 * 1024
    # v5e (16 MiB default scoped limit, ~820 GB/s HBM) and unknown chips:
    # modest tiles, explicitly raised scoped limit still far below physical.
    return 6 * 1024 * 1024, 32 * 1024 * 1024


def _pick_tile_n(n, h, itemsize, tile_bytes_budget):
    """Rows per streamed feature tile, sized purely by the byte budget
    (no max_rows cap) and kept a multiple of 128 (or at least 8) when tiled."""
    rows = tile_bytes_budget // max(1, h * itemsize)
    if rows >= n:
        return n
    if rows >= 128:
        return (rows // 128) * 128
    return max(8, (rows // 8) * 8)


def discriminator_forward(features, weight, summary, *, tile_bytes_budget=None):
    """features: (N, H), weight: (H, H), summary: (H,) -> (N,)"""
    n, h = features.shape
    assert weight.shape == (h, h)
    assert summary.shape == (h,)

    budget, vmem_limit = _device_vmem_plan()
    if tile_bytes_budget is not None:
        budget = tile_bytes_budget

    itemsize = jnp.dtype(features.dtype).itemsize
    tile_n = _pick_tile_n(n, h, itemsize, budget)
    grid = (pl.cdiv(n, tile_n),)

    # TODO(synk): the resident (H, H) weight block is fine for the validated
    # H=32/128; a K-tiled grid would be needed for very large hidden sizes.
    out_col = pl.pallas_call(
        _score_kernel,
        out_shape=jax.ShapeDtypeStruct((n, 1), features.dtype),
        grid_spec=pl.GridSpec(
            grid=grid,
            in_specs=[
                pl.BlockSpec((h, h), lambda i: (0, 0)),        # weight: resident
                pl.BlockSpec((h, 1), lambda i: (0, 0)),        # summary col: resident
                pl.BlockSpec((tile_n, h), lambda i: (i, 0)),   # streamed feature tiles
            ],
            out_specs=pl.BlockSpec((tile_n, 1), lambda i: (i, 0)),
        ),
        compiler_params=pltpu.CompilerParams(
            dimension_semantics=("parallel",),       # megacore sharding on v7x
            vmem_limit_bytes=int(vmem_limit),
        ),
        cost_estimate=pl.CostEstimate(
            flops=2 * n * h + 2 * h * h * grid[0],
            transcendentals=0,
            bytes_accessed=n * h * itemsize + h * h * 4 + h * 4 + n * itemsize,
        ),
    )(weight, summary.reshape(h, 1), features)

    return out_col.reshape(n)  # matches torch.matmul((N,H), (H,)) -> (N,)


def _reference(features, weight, summary):
    ws = jnp.matmul(weight, summary, precision=lax.Precision.HIGHEST)
    return jnp.matmul(features, ws, precision=lax.Precision.HIGHEST)


if __name__ == "__main__":
    key = jax.random.PRNGKey(0)

    # Case 1: small shapes matching the module's hidden size (H=32, N=16 nodes).
    n_hidden, n_nodes = 32, 16
    k_w, k_f, k_s, key = jax.random.split(key, 4)
    bound = 1.0 / math.sqrt(n_hidden)
    weight = jax.random.uniform(
        k_w, (n_hidden, n_hidden), dtype=jnp.float32, minval=-bound, maxval=bound
    )
    features = jax.random.normal(k_f, (n_nodes, n_hidden), dtype=jnp.float32)
    summary = jax.random.normal(k_s, (n_hidden,), dtype=jnp.float32)

    out = jax.block_until_ready(discriminator_forward(features, weight, summary))
    ref = _reference(features, weight, summary)
    assert out.shape == (n_nodes,)
    assert jnp.allclose(out, ref, atol=1e-2, rtol=1e-2)

    # Case 2: larger N with a deliberately small tile budget to exercise the
    # multi-tile streamed path (grid of 5, partial 128-row tail block).
    n_hidden2, n_nodes2 = 128, 4224
    k_w2, k_f2, k_s2, key = jax.random.split(key, 4)
    bound2 = 1.0 / math.sqrt(n_hidden2)
    weight2 = jax.random.uniform(
        k_w2, (n_hidden2, n_hidden2), dtype=jnp.float32, minval=-bound2, maxval=bound2
    )
    features2 = jax.random.normal(k_f2, (n_nodes2, n_hidden2), dtype=jnp.float32)
    summary2 = jax.random.normal(k_s2, (n_hidden2,), dtype=jnp.float32)

    out2 = jax.block_until_ready(
        discriminator_forward(
            features2, weight2, summary2, tile_bytes_budget=512 * 1024
        )
    )
    ref2 = _reference(features2, weight2, summary2)
    assert out2.shape == (n_nodes2,)
    assert jnp.allclose(out2, ref2, atol=1e-2, rtol=1e-2)

    print("KERNEL_OK")
</pallas_src>

<mosaic_0001>
module attributes {stable_mosaic.version = 11 : i64} {
  func.func @_score_kernel(%arg0: i32, %arg1: memref<32x32xf32, #tpu.memory_space<vmem>>, %arg2: memref<32x1xf32, #tpu.memory_space<vmem>>, %arg3: memref<16x32xf32, #tpu.memory_space<vmem>>, %arg4: memref<16x1xf32, #tpu.memory_space<vmem>>) attributes {dimension_semantics = [#tpu.dimension_semantics<parallel>], iteration_bounds = array<i64: 1>, scalar_prefetch = 0 : i64, scratch_operands = 0 : i64, tpu.core_type = #tpu.core_type<tc>, window_params = [{pipeline_mode = #tpu.pipeline_mode<synchronous>, transform_indices = @transform_0, window_bounds = array<i64: 32, 32>}, {pipeline_mode = #tpu.pipeline_mode<synchronous>, transform_indices = @transform_1, window_bounds = array<i64: 32, 1>}, {transform_indices = @transform_2, window_bounds = array<i64: 16, 32>}, {transform_indices = @transform_3, window_bounds = array<i64: 16, 1>}]} {
    %c0 = arith.constant 0 : index
    %c0_0 = arith.constant 0 : index
    %0 = vector.load %arg1[%c0, %c0_0] : memref<32x32xf32, #tpu.memory_space<vmem>>, vector<32x32xf32>
    %c0_1 = arith.constant 0 : index
    %c0_2 = arith.constant 0 : index
    %1 = vector.load %arg2[%c0_1, %c0_2] : memref<32x1xf32, #tpu.memory_space<vmem>>, vector<32x1xf32>
    %cst = arith.constant dense<0.000000e+00> : vector<32x1xf32>
    %2 = tpu.matmul %0, %1, %cst {dimension_numbers = #tpu.dot_dimension_numbers<[1], [0], [0], [1], [0, 0, 1, 1], [], []>} : vector<32x32xf32>, vector<32x1xf32>, vector<32x1xf32> -> vector<32x1xf32>
    %c0_3 = arith.constant 0 : index
    %c0_4 = arith.constant 0 : index
    %3 = vector.load %arg3[%c0_3, %c0_4] : memref<16x32xf32, #tpu.memory_space<vmem>>, vector<16x32xf32>
    %cst_5 = arith.constant dense<0.000000e+00> : vector<16x1xf32>
    %4 = tpu.matmul %3, %2, %cst_5 {dimension_numbers = #tpu.dot_dimension_numbers<[1], [0], [0], [1], [0, 0, 1, 1], [], []>} : vector<16x32xf32>, vector<32x1xf32>, vector<16x1xf32> -> vector<16x1xf32>
    %c0_6 = arith.constant 0 : index
    %c0_7 = arith.constant 0 : index
    %5 = vector.load %arg4[%c0_6, %c0_7] : memref<16x1xf32, #tpu.memory_space<vmem>>, vector<16x1xf32>
    tpu.vector_store %arg4[%c0_6, %c0_7], %4 {strides = array<i32>} : memref<16x1xf32, #tpu.memory_space<vmem>>, vector<16x1xf32>,
    return
  }
  func.func @transform_0(%arg0: i32) -> (i32, i32) {
    %c0_i32 = arith.constant 0 : i32
    %c0_i32_0 = arith.constant 0 : i32
    %c0_i32_1 = arith.constant 0 : i32
    return %c0_i32, %c0_i32_0 : i32, i32
  }
  func.func @transform_1(%arg0: i32) -> (i32, i32) {
    %c0_i32 = arith.constant 0 : i32
    %c0_i32_0 = arith.constant 0 : i32
    %c0_i32_1 = arith.constant 0 : i32
    return %c0_i32, %c0_i32_0 : i32, i32
  }
  func.func @transform_2(%arg0: i32) -> (i32, i32) {
    %c0_i32 = arith.constant 0 : i32
    %c0_i32_0 = arith.constant 0 : i32
    return %arg0, %c0_i32 : i32, i32
  }
  func.func @transform_3(%arg0: i32) -> (i32, i32) {
    %c0_i32 = arith.constant 0 : i32
    %c0_i32_0 = arith.constant 0 : i32
    return %arg0, %c0_i32 : i32, i32
  }
}

</mosaic_0001>

<bundles_post_ra>
// kernel: tpu_custom_call.1
= control target key start
LH: loop header
LB: loop body
LE: loop exit
PB: predicated region body
PF: predicated region fallthrough
CT: control target
= control target key end

     0   :  { %8 = vsyncpa [#allocation3], 0  ;;  %s162_s15 = smov [#allocation2]   ;;  %s163_s17 = smov 128   ;;  %s224_s0 = inlined_call_operand.vmem [shape: f32[32,32], index: 0, kind: input, shape index: {}]   ;;  %s225_s1 = inlined_call_operand.vmem [shape: f32[32,1], index: 1, kind: input, shape index: {}]   ;;  %s226_s2 = inlined_call_operand.hbm [shape: f32[16,32], index: 2, kind: input, shape index: {}]   ;;  %s227_s3 = inlined_call_operand.vmem [shape: f32[16,1], index: 3, kind: output, shape index: {}]  }
   0x1   :  { %s17_s14 = sshll.u32 %s226_s2, 4  ;;  %s19_s16 = sshll.u32 %s162_s15, 4  ;;  %s18_s14 = int_to_ptr.hbm [resolvable:$true] %s17_s14  ;;  %s20_s16 = int_to_ptr.vmem [resolvable:$true] %s19_s16 }
   0x2   :  { %s164_s18 = smov 8  }
   0x3   :  { %25 = dma.hbm_to_vmem [thread:$0]  %s18_s14, 256, %s20_s16, [#allocation3], %s163_s17, %s163_s17, %s164_s18  }
   0x4   :  { %160 = dma.done.wait [#allocation3], 256  }
   0x5   :  { %161 = vsyncadd [#allocation3], 4294967040  ;;  %v37_v0 = vld [vmem:[%s225_s1 + $0x18] sm:$0xff]  ;;  %v36_v1 = vld [vmem:[%s225_s1 + $0x10] sm:$0xff]  ;;  %vm38_vm0 = vcmask 261120   ;;  %vm111_vm1 = vcmask 7168  }
   0x6   :  { %125 = vmatpush.msra.mxu2 %v37_v0  ;;  %126 = vmatpush.msra.mxu3 %v37_v0  ;;  %v35_v2 = vld [vmem:[%s225_s1 + $0x8] sm:$0xff]  ;;  %v34_v3 = vld [vmem:[%s225_s1] sm:$0xff]  ;;  %v33_v5 = vld [vmem:[%s224_s0 + $0x18] sm:$0xff] }
   0x7   :  { %63 = vmatpush.msra.mxu0 %v37_v0  ;;  %v31_v4 = vld [vmem:[%s224_s0 + $0x8] sm:$0xff]  ;;  %v30_v6 = vld [vmem:[%s224_s0] sm:$0xff]  ;;  %v32_v7 = vld [vmem:[%s224_s0 + $0x10] sm:$0xff] }
   0x8   :  { %127 = vmatpush.msra.mxu2 %v36_v1  ;;  %128 = vmatpush.msra.mxu3 %v36_v1  ;;  %v80_v12 = vld [vmem:[#allocation2] sm:$0xff]  ;;  %v81_v13 = vld [vmem:[#allocation2 + $0x8] sm:$0xff] }
   0x9   :  { %64 = vmatpush.msra.mxu0 %v36_v1 }
   0xa   :  { %129 = vmatpush.msra.mxu2 %v35_v2  ;;  %130 = vmatpush.msra.mxu3 %v35_v2 }
   0xb   :  { %65 = vmatpush.msra.mxu0 %v35_v2 }
   0xc   :  { %131 = vmatpush.msra.mxu2 %v34_v3  ;;  %132 = vmatpush.msra.mxu3 %v34_v3 }
   0xd   :  { %120 = vmatmul.msk.f32.vlgmr.msra.gmra.mxu2 %vm38_vm0, %v31_v4  ;;  %122 = vmatmul.msk.f32.vlgmr.msra.gmra.mxu3 %vm38_vm0, %v33_v5 }
   0xe   :  { %66 = vmatpush.msra.mxu0 %v34_v3 }
   0xf   :  { %119 = vmatmul.msk.f32.vlgmr.msra.gmra.mxu0 %vm38_vm0, %v30_v6 }
  0x15   :  { %121 = vmatmul.msk.f32.gmra.mxu2 %vm38_vm0, %v32_v7 }
  0x8c   :  { %v68_v11 = vpop.f32.mrf.mxu0 }
  0x90   :  { %v71_v8 = vpop.f32.mrf.mxu2  ;;  %v77_v9 = vpop.f32.mrf.mxu3 }
  0x91   :  { %100 = vmatpush.msra.mxu1 %v77_v9 }
  0x98   :  { %v74_v10 = vpop.f32.mrf.mxu2 }
  0x99   :  { %101 = vmatpush.msra.mxu1 %v74_v10 }
  0x9b   :  { %102 = vmatpush.msra.mxu1 %v71_v8 }
  0x9d   :  { %103 = vmatpush.msra.mxu1 %v68_v11 }
  0x9e   :  { %123 = vmatmul.msk.f32.vlgmr.msra.gmra.mxu1 %vm38_vm0, %v80_v12 }
  0xa6   :  { %124 = vmatmul.msk.f32.gmra.mxu1 %vm38_vm0, %v81_v13 }
 0x11b   :  { %v105_v14 = vpop.f32.mrf.mxu1 }
 0x11c   :  { %112 = vst.msk [vmem:[%s227_s3] sm:$0xff] %vm111_vm1, %v105_v14 }
 0x123   :  { %v108_v15 = vpop.f32.mrf.mxu1 }
 0x124   :  { %113 = vst.msk [vmem:[%s227_s3 + $0x8] sm:$0xff] %vm111_vm1, %v108_v15 }
 0x125   :  { %118 = vsyncpa [#allocation3], 1 }

</bundles_post_ra>
